<compile_context>
chip_gen: v7x
topology: tpu7x:2x2x1
jax: 0.10.0
libtpu: 0.0.40
codegen_flags: <defaults>
</compile_context>

<pallas_src>
import jax
import jax.numpy as jnp
from jax.experimental import pallas as pl
from jax.experimental.pallas import tpu as pltpu


def _area_pool_kernel(x_ref, pw_ref, o_ref):
    # x_ref : (G, B, DD, bOH, 2*W)  lane dim packs the H pair: [row 2*oh | row 2*oh+1]
    # pw_ref: (W, OW)               0 / (1/(4*DD)) pair-sum matrix along W
    # o_ref : (G, B, bOH, OW)       output block, NCDHW layout
    s = x_ref[:, :, 0, :, :]
    if x_ref.shape[2] == 2:                       # static (trace-time) branch
        s = s + x_ref[:, :, 1, :, :]              # D-pair (VPU)
    w = s.shape[-1] // 2
    t = s[..., :w] + s[..., w:]                   # H-pair: lane-half add (VPU)
    g, b, boh, _ = t.shape
    o = jnp.dot(t.reshape(g * b * boh, w), pw_ref[...],
                preferred_element_type=jnp.float32)          # W-pair + mean scale (MXU)
    o_ref[...] = o.reshape(g, b, boh, o.shape[-1]).astype(o_ref.dtype)


def _divisors(n):
    return sorted(d for d in range(1, n + 1) if n % d == 0)


def adaptive_interpolation_downsample(x, *, downsample_d=True,
                                      block_budget_bytes=2 * 1024 * 1024):
    """x: [N, C, D, H, W] -> y: [N, C, D//DD, H//2, W//2], DD = 2 if downsample_d else 1.

    Equivalent to nnf.interpolate(x, scale_factor=(0.5 if can_downsample_d else 1, 0.5, 0.5),
    mode='area', antialias=False) for even spatial dims.
    """
    N, C, D, H, W = x.shape
    if H % 2 or W % 2 or (downsample_d and D % 2):
        raise ValueError("H, W (and D when downsample_d) must be even for area pooling at 0.5.")
    DD = 2 if downsample_d else 1
    OD, OH, OW = D // DD, H // 2, W // 2
    NC = N * C

    itemsize = x.dtype.itemsize
    sub = 8 * (4 // itemsize) if itemsize <= 4 else 8     # sublane tile: f32 8, bf16 16, i8 32
    lane = 128
    ru = lambda a, m: -(-a // m) * m

    def blk_bytes(g, b, boh):
        """Padded VMEM bytes of ONE input + ONE output buffer for a (g, b, boh) block."""
        bin_ = g * b * DD * ru(boh, sub) * ru(2 * W, lane) * itemsize
        bout = g * b * ru(boh, sub) * ru(OW, lane) * itemsize
        return bin_ + bout

    # ---- block selection (trace-time Python; double-buffered total stays well under the
    # ---- scoped-VMEM defaults of v5e/v6e/v7x, so vmem_limit_bytes is left at default) ----
    budget = block_budget_bytes
    # 1) OH tile: full OH unless even a single (1,1) depth slice is too big (huge planes).
    bOH = OH
    if blk_bytes(1, 1, OH) > budget:
        cands = [d for d in _divisors(OH) if d % sub == 0 and blk_bytes(1, 1, d) <= budget]
        if cands:
            bOH = max(cands)
    # 2) depth block: largest divisor of OD that fits the budget.
    B = max(d for d in _divisors(OD) if d == 1 or blk_bytes(1, d, bOH) <= budget)
    # 3) NC grouping: only when a full per-slice volume already fits; keep >= 2 grid steps
    #    so both v7x TensorCores get work.
    G = 1
    if B == OD and bOH == OH and NC > 1:
        cands = [d for d in _divisors(NC) if NC // d >= 2 and blk_bytes(d, B, bOH) <= budget]
        if cands:
            G = max(cands)
    # 4) never leave a single-step grid when the depth axis can still be split (v7x).
    if NC // G == 1 and OD // B == 1 and OH // bOH == 1 and OD > 1:
        B = max(d for d in _divisors(OD) if d < OD)

    # ---- free contiguous reshape: (NC, D, H, W) == (NC, OD, DD, OH, 2W), no data movement.
    xr = x.reshape(NC, OD, DD, OH, 2 * W)

    # Constant W pair-sum matrix in the INPUT dtype (fast MXU path for bf16); the 1/(4*DD)
    # mean scale is folded in so no post-matmul multiply is needed.
    pw = jnp.where(jnp.arange(W)[:, None] // 2 == jnp.arange(OW)[None, :],
                   1.0 / (4 * DD), 0.0).astype(x.dtype)

    grid = (NC // G, OD // B, OH // bOH)

    out = pl.pallas_call(
        _area_pool_kernel,
        out_shape=jax.ShapeDtypeStruct((NC, OD, OH, OW), x.dtype),
        grid_spec=pltpu.PrefetchScalarGridSpec(
            num_scalar_prefetch=0,
            grid=grid,
            in_specs=[
                pl.BlockSpec((G, B, DD, bOH, 2 * W), lambda i, j, h: (i, j, 0, h, 0)),
                pl.BlockSpec((W, OW), lambda i, j, h: (0, 0)),   # grid-invariant constant
            ],
            out_specs=pl.BlockSpec((G, B, bOH, OW), lambda i, j, h: (i, j, h, 0)),
        ),
        compiler_params=pltpu.CompilerParams(
            dimension_semantics=("parallel", "parallel", "parallel"),
        ),
    )(xr, pw)

    # Free reshape: split the leading dim back to (N, C).
    return out.reshape(N, C, OD, OH, OW)


if __name__ == "__main__":
    key = jax.random.PRNGKey(0)
    N, C, D, H, W = 2, 4, 8, 16, 16
    x = jax.random.normal(key, (N, C, D, H, W), dtype=jnp.float32)

    # TODO(synk): SpatialTensor bookkeeping (x.num_downsamples += 1; the can_downsample_d
    # flag) is pure metadata; it is exposed here as the `downsample_d` argument.

    # can_downsample_d = True branch: scale (0.5, 0.5, 0.5) == 2x2x2 mean pooling.
    y = adaptive_interpolation_downsample(x)
    y = jax.block_until_ready(y)
    ref = x.reshape(N, C, D // 2, 2, H // 2, 2, W // 2, 2).mean(axis=(3, 5, 7))
    assert y.shape == ref.shape, (y.shape, ref.shape)
    assert jnp.allclose(y, ref, atol=1e-5, rtol=1e-5), float(jnp.max(jnp.abs(y - ref)))

    # can_downsample_d = False branch: scale (1, 0.5, 0.5) == 1x2x2 mean pooling.
    y2 = adaptive_interpolation_downsample(x, downsample_d=False)
    y2 = jax.block_until_ready(y2)
    ref2 = x.reshape(N, C, D, H // 2, 2, W // 2, 2).mean(axis=(4, 6))
    assert y2.shape == ref2.shape, (y2.shape, ref2.shape)
    assert jnp.allclose(y2, ref2, atol=1e-5, rtol=1e-5), float(jnp.max(jnp.abs(y2 - ref2)))

    print("KERNEL_OK")
</pallas_src>

<mosaic_0001>
module attributes {stable_mosaic.version = 11 : i64} {
  func.func @_area_pool_kernel(%arg0: i32, %arg1: i32, %arg2: i32, %arg3: memref<4x4x2x8x32xf32, #tpu.memory_space<vmem>>, %arg4: memref<16x8xf32, #tpu.memory_space<vmem>>, %arg5: memref<4x4x8x8xf32, #tpu.memory_space<vmem>>) attributes {dimension_semantics = [#tpu.dimension_semantics<parallel>, #tpu.dimension_semantics<parallel>, #tpu.dimension_semantics<parallel>], iteration_bounds = array<i64: 2, 1, 1>, scalar_prefetch = 0 : i64, scratch_operands = 0 : i64, tpu.core_type = #tpu.core_type<tc>, window_params = [{transform_indices = @transform_0, window_bounds = array<i64: 4, 4, 2, 8, 32>}, {pipeline_mode = #tpu.pipeline_mode<synchronous>, transform_indices = @transform_1, window_bounds = array<i64: 16, 8>}, {transform_indices = @transform_2, window_bounds = array<i64: 4, 4, 8, 8>}]} {
    %c0 = arith.constant 0 : index
    %c0_0 = arith.constant 0 : index
    %c0_1 = arith.constant 0 : index
    %c0_2 = arith.constant 0 : index
    %c0_3 = arith.constant 0 : index
    %0 = vector.load %arg3[%c0, %c0_0, %c0_1, %c0_2, %c0_3] : memref<4x4x2x8x32xf32, #tpu.memory_space<vmem>>, vector<4x4x1x8x32xf32>
    %1 = vector.shape_cast %0 : vector<4x4x1x8x32xf32> to vector<4x4x8x32xf32>
    %c0_4 = arith.constant 0 : index
    %c0_5 = arith.constant 0 : index
    %c1 = arith.constant 1 : index
    %c0_6 = arith.constant 0 : index
    %c0_7 = arith.constant 0 : index
    %2 = vector.load %arg3[%c0_4, %c0_5, %c1, %c0_6, %c0_7] : memref<4x4x2x8x32xf32, #tpu.memory_space<vmem>>, vector<4x4x1x8x32xf32>
    %3 = vector.shape_cast %2 : vector<4x4x1x8x32xf32> to vector<4x4x8x32xf32>
    %4 = arith.addf %1, %3 : vector<4x4x8x32xf32>
    %5 = vector.extract_strided_slice %4 {offsets = [0, 0, 0, 0], sizes = [4, 4, 8, 16], strides = [1, 1, 1, 1]} : vector<4x4x8x32xf32> to vector<4x4x8x16xf32>
    %6 = vector.extract_strided_slice %4 {offsets = [0, 0, 0, 16], sizes = [4, 4, 8, 16], strides = [1, 1, 1, 1]} : vector<4x4x8x32xf32> to vector<4x4x8x16xf32>
    %7 = arith.addf %5, %6 : vector<4x4x8x16xf32>
    %8 = vector.shape_cast %7 : vector<4x4x8x16xf32> to vector<128x16xf32>
    %c0_8 = arith.constant 0 : index
    %c0_9 = arith.constant 0 : index
    %9 = vector.load %arg4[%c0_8, %c0_9] : memref<16x8xf32, #tpu.memory_space<vmem>>, vector<16x8xf32>
    %cst = arith.constant dense<0.000000e+00> : vector<128x8xf32>
    %10 = tpu.matmul %8, %9, %cst {dimension_numbers = #tpu.dot_dimension_numbers<[1], [0], [0], [1], [0, 0, 1, 1], [], []>} : vector<128x16xf32>, vector<16x8xf32>, vector<128x8xf32> -> vector<128x8xf32>
    %11 = vector.shape_cast %10 : vector<128x8xf32> to vector<4x4x8x8xf32>
    %c0_10 = arith.constant 0 : index
    %c0_11 = arith.constant 0 : index
    %c0_12 = arith.constant 0 : index
    %c0_13 = arith.constant 0 : index
    %12 = vector.load %arg5[%c0_10, %c0_11, %c0_12, %c0_13] : memref<4x4x8x8xf32, #tpu.memory_space<vmem>>, vector<4x4x8x8xf32>
    tpu.vector_store %arg5[%c0_10, %c0_11, %c0_12, %c0_13], %11 {strides = array<i32>} : memref<4x4x8x8xf32, #tpu.memory_space<vmem>>, vector<4x4x8x8xf32>,
    return
  }
  func.func @transform_0(%arg0: i32, %arg1: i32, %arg2: i32) -> (i32, i32, i32, i32, i32) {
    %c0_i32 = arith.constant 0 : i32
    %c0_i32_0 = arith.constant 0 : i32
    %c0_i32_1 = arith.constant 0 : i32
    return %arg0, %arg1, %c0_i32, %arg2, %c0_i32_0 : i32, i32, i32, i32, i32
  }
  func.func @transform_1(%arg0: i32, %arg1: i32, %arg2: i32) -> (i32, i32) {
    %c0_i32 = arith.constant 0 : i32
    %c0_i32_0 = arith.constant 0 : i32
    %c0_i32_1 = arith.constant 0 : i32
    return %c0_i32, %c0_i32_0 : i32, i32
  }
  func.func @transform_2(%arg0: i32, %arg1: i32, %arg2: i32) -> (i32, i32, i32, i32) {
    %c0_i32 = arith.constant 0 : i32
    %c0_i32_0 = arith.constant 0 : i32
    return %arg0, %arg1, %arg2, %c0_i32 : i32, i32, i32, i32
  }
}

</mosaic_0001>

<bundles_post_ra>
// kernel: tpu_custom_call.1
= control target key start
LH: loop header
LB: loop body
LE: loop exit
PB: predicated region body
PF: predicated region fallthrough
CT: control target
= control target key end

     0   :  { %7 = vsyncpa [#allocation3], 0  ;;  %s1269_s0 = inlined_call_operand.hbm [shape: f32[8,4,2,8,32], index: 0, kind: input, shape index: {}]   ;;  %s1270_s1 = inlined_call_operand.vmem [shape: f32[16,8], index: 1, kind: input, shape index: {}]   ;;  %s1271_s2 = inlined_call_operand.hbm [shape: f32[8,4,8,8], index: 2, kind: output, shape index: {}]  }
   0x1   :  { %9 = vsyncpa [#allocation3 + $0x1], 0 }
   0x2   :  { %10 = vsyncpa [#allocation4], 0 }
   0x3   :  { %12 = vsyncpa [#allocation4 + $0x1], 0  ;;  %s958_s9 = smov 0   ;;  %s960_s10 = smov 0  }
   0x4   :  { %s962_s11 = smov 0   ;;  %s964_s12 = smov 0  }
   0x5   :  { %s966_s13 = smov 0   ;;  %s968_s14 = smov 0  }
   0x6 LB: > { %s650_s15 = sadd.s32 4294967295, %s934_s14   ;;  %s651_s16 = sadd.s32 4294967294, %s934_s14   ;;  %s934_s14 = sphi %s968_s14, %s18_s14   ;;  %s930_s13 = sphi %s966_s13, %s1286_s13   ;;  %s926_s12 = sphi %s964_s12, %s1285_s12   ;;  %s922_s11 = sphi %s962_s11, %s1284_s11   ;;  %s918_s10 = sphi %s960_s10, %s1283_s10   ;;  %s914_s9 = sphi %s958_s9, %s1282_s9  }
   0x7   : > { %s37_s17 = sadd.s32 1, %s930_s13  ;;  %s48_s18 = sadd.s32 1, %s922_s11 }
   0x8   : > { %p39_p0 = scmp.ge.s32.totalorder %s37_s17, 2  ;;  %p55_p1 = scmp.ne.s32.totalorder %s922_s11, %s918_s10 }
   0x9   : > { %p56_p2 = scmp.eq.s32.totalorder %s934_s14, 0  ;;  %p61_p3 = scmp.ne.s32.totalorder %s918_s10, %s914_s9 }
   0xa   : > { %s1288_s17 = smov (%p39_p0, %s37_s17), 0  ;;  %p62_p5 = scmp.eq.s32.totalorder %s650_s15, 0 }
   0xb   : > { %p999_p4 = por %p56_p2, %p55_p1  ;;  %s41_s20 = ssub.s32 %s930_s13, %s1288_s17 }
   0xc   : > { %p110_p6 = scmp.eq.s32.totalorder %s650_s15, 1  ;;  %p46_p7 = scmp.eq.s32.totalorder %s41_s20, 0 }
   0xd   : > { %p1005_p8 = por %p62_p5, %p61_p3  ;;  %p116_p10 = scmp.eq.s32.totalorder %s651_s16, 1 }
   0xe   : > { %p1009_p9 = por %p110_p6, %p55_p1  ;;  %p767_p13 = scmp.lt.s32.totalorder %s934_s14, 2 }
   0xf   : > { %s1014_s23 = scalar_select %p46_p7, %s922_s11, %s48_s18  }
  0x10   : > { %s1275_s22 = scalar_select %p1009_p9, 1, 0 }
  0x11   : > { %p1016_p11 = por %p116_p10, %p61_p3  ;;  %s139_s25 = sand.u32 1, %s922_s11  }
  0x12   : > { %s654_s26 = sshll.u32 %s139_s25, 8  ;;  %s700_s27 = sshll.u32 %s930_s13, 12 }
  0x13   : > { %s1276_s24 = scalar_select %p1016_p11, 1, 0 }
  0x14   : > { %s1027_s30 = scalar_lea.hbm %s1269_s0, %s700_s27  ;;  %s143_s3 = scalar_lea.vmem [#allocation2], %s654_s26 }
  0x15   : > { %s155_s4 = sshll.u32 %s143_s3, 4  ;;  %p1033_p0 = pnand %p767_p13, %p999_p4  ;;  %s1029_s4 = int_to_ptr.vmem [resolvable:$true] %s155_s4 }
  0x16   : > { %s1038_s6 = scalar_lea.sflag [#allocation3], %s139_s25  ;;  %s822_s7 = scalar_lea.hbm %s1027_s30, 4096 }
  0x17   : > { %p823_p2 = scmp.ne.s32.totalorder %s1027_s30, %s822_s7  ;;  %p824_p3 = pneg %p1033_p0 }
  0x18   : > { %s827_s16 = scalar_lea.hbm %s1269_s0, 8192  ;;  %p828_p4 = scmp.lt.u32.totalorder %s1027_s30, %s1269_s0 }
  0x19   : > { %p825_p5 = pnand %p824_p3, %p823_p2  ;;  %p829_p7 = scmp.lt.u32.totalorder %s827_s16, %s822_s7 }
  0x1a   : > { %p831_p13 = scmp.lt.u32.totalorder %s822_s7, %s1027_s30 }
  0x1b   : > { %p826_p6 = pneg %p825_p5  ;;  %p830_p10 = por %p829_p7, %p828_p4 }
  0x1d   : > { %p832_p12 = por %p831_p13, %p830_p10 }
  0x1f   : > { %p833_p1 = pnand %p832_p12, %p826_p6 }
  0x21   : > { %836 = shalt.err (!%p833_p1)
}
  0x22   : > { %s837_s20 = scalar_lea.vmem %s1029_s4, 4096  ;;  %s936_s25 = smov [#allocation2]  }
  0x23   : > { %p838_p2 = scmp.ne.s32.totalorder %s1029_s4, %s837_s20  ;;  %s842_s26 = sshll.u32 %s936_s25, 4  ;;  %s843_s26 = int_to_ptr.vmem [resolvable:$false] %s842_s26 }
  0x24   : > { %s844_s27 = scalar_lea.vmem %s843_s26, 8192  ;;  %p845_p9 = scmp.lt.s32.totalorder %s1029_s4, %s843_s26 }
  0x25   : > { %p840_p5 = pnand %p838_p2, %p824_p3  ;;  %p846_p4 = scmp.lt.s32.totalorder %s844_s27, %s837_s20 }
  0x27   : > { %p841_p11 = pneg %p840_p5  ;;  %p847_p7 = por %p846_p4, %p845_p9 }
  0x29   : > { %p848_p10 = pnand %p847_p7, %p841_p11 }
  0x2b   : > { %851 = shalt.err (!%p848_p10)
}
  0x2c   : > { %s937_s28 = smov 128   ;;  %s938_s29 = smov 8  }
  0x2d   : > { %762 = dma.hbm_to_vmem [thread:$0]  (!%p1033_p0), %s1027_s30, 4096, %s1029_s4, %s1038_s6, %s937_s28, %s937_s28, %s938_s29  }
  0x2e   : > { %p163_p12 = scmp.lt.s32.totalorder %s934_s14, 3  ;;  %p1278_p1 = scmp.ge.s32.totalorder %s934_s14, 1 }
  0x30   : > { %p164_p3 = pnand %p1278_p1, %p163_p12 }
  0x31   : > { %s1070_s3 = sand.u32 (!%p164_p3), 1, %s918_s10  }
  0x32   : > { %167 = sbr.rel (%p164_p3) target bundleno = 435 (0x1b3), region = 28  ;;  %s659_s7 = sshll.u32 (!%p164_p3), %s1070_s3, 8 }
  0x33   : > { %s170_s8 = scalar_lea.sflag (!%p164_p3), [#allocation3], %s1070_s3  ;;  %s1074_s15 = scalar_lea.vmem (!%p164_p3), [#allocation2], %s659_s7 }
  0x39   : > { %905 = dma.done.wait (%p1005_p8), %s170_s8, 4096  }
  0x3a   : > { %907 = vsyncadd (%p1005_p8), %s170_s8, 4294963200  ;;  %v199_v0 = vld [vmem:[%s1074_s15 + $0x10] sm:$0xff]  ;;  %v662_v1 = vld [vmem:[%s1074_s15 + $0x18] sm:$0xff]  ;;  %s939_s21 = smov 112   ;;  %vm329_vm0 = vcmask 130048   ;;  %s660_s16 = sshll.u32 %s1070_s3, 7 }
  0x3b   : > { %v198_v2 = vld [vmem:[%s1074_s15] sm:$0xff]  ;;  %v1083_v3 = vadd.f32 %v662_v1, %v199_v0  ;;  %v661_v4 = vld [vmem:[%s1074_s15 + $0x8] sm:$0xff]  ;;  %v207_v5 = vld [vmem:[%s1074_s15 + $0x90] sm:$0xff]  ;;  %vm523_vm1 = vcmask 64512   ;;  %s1179_s18 = scalar_lea.vmem [#allocation5], %s660_s16  ;;  %s702_s19 = sshll.u32 %s926_s12, 11 }
  0x3c   : > { %v670_v6 = vld [vmem:[%s1074_s15 + $0x98] sm:$0xff]  ;;  %v1088_v7 = vadd.f32 %v661_v4, %v198_v2  ;;  %v206_v8 = vld [vmem:[%s1074_s15 + $0x80] sm:$0xff]  ;;  %v669_v9 = vld [vmem:[%s1074_s15 + $0x88] sm:$0xff]  ;;  %s558_s20 = sshll.u32 %s1179_s18, 4  ;;  %s1210_s27 = scalar_lea.hbm %s1271_s2, %s702_s19  ;;  %s1212_s20 = int_to_ptr.vmem [resolvable:$true] %s558_s20 }
  0x3d   : > { %265 = vrot.lane.b32.xlu1 %v1083_v3, %s939_s21  ;;  %v1094_v10 = vadd.f32 %v670_v6, %v207_v5  ;;  %v1098_v11 = vadd.f32 %v669_v9, %v206_v8  ;;  %v208_v12 = vld [vmem:[%s1074_s15 + $0xa0] sm:$0xff]  ;;  %v671_v13 = vld [vmem:[%s1074_s15 + $0xa8] sm:$0xff]  ;;  %v209_v18 = vld [vmem:[%s1074_s15 + $0xb0] sm:$0xff]  ;;  %s541_s12 = scalar_lea.sflag [#allocation4], %s1070_s3  ;;  %s852_s28 = scalar_lea.vmem %s1212_s20, 2048 }
  0x3e   : > { %263 = vrot.lane.b32.xlu0 %v1088_v7, %s939_s21  ;;  %v200_v14 = vld [vmem:[%s1074_s15 + $0x20] sm:$0xff]  ;;  %v663_v15 = vld [vmem:[%s1074_s15 + $0x28] sm:$0xff]  ;;  %v1106_v16 = vadd.f32 %v671_v13, %v208_v12  ;;  %v672_v19 = vld [vmem:[%s1074_s15 + $0xb8] sm:$0xff]  ;;  %p853_p8 = scmp.ne.s32.totalorder %s1212_s20, %s852_s28  ;;  %p1279_p9 = scmp.ne.s32.totalorder %s1275_s22, 0 }
  0x3f   : > { %v1110_v17 = vadd.f32 %v663_v15, %v200_v14  ;;  %v201_v20 = vld [vmem:[%s1074_s15 + $0x30] sm:$0xff]  ;;  %v664_v21 = vld [vmem:[%s1074_s15 + $0x38] sm:$0xff]  ;;  %v327_v22 = vld [vmem:[%s1270_s1] sm:$0xff]  ;;  %v1121_v23 = vadd.f32 %v672_v19, %v209_v18  ;;  %s940_s29 = smov [#allocation5]  }
  0x40   : > { %v328_v24 = vld [vmem:[%s1270_s1 + $0x8] sm:$0xff]  ;;  %v234_v25 = vadd.f32 %v664_v21, %v201_v20  ;;  %v210_v26 = vld [vmem:[%s1074_s15 + $0xc0] sm:$0xff]  ;;  %v211_v33 = vld [vmem:[%s1074_s15 + $0xd0] sm:$0xff]  ;;  %p854_p11 = pnand %p853_p8, %p1279_p9  ;;  %s856_s7 = sshll.u32 %s940_s29, 4  ;;  %s857_s7 = int_to_ptr.vmem [resolvable:$false] %s856_s7 }
  0x41   : > { %281 = vrot.lane.b32.xlu1 %v1094_v10, %s939_s21  ;;  %v673_v27 = vld [vmem:[%s1074_s15 + $0xc8] sm:$0xff]  ;;  %v749_v28 = vpack.c.bf16 %v328_v24, %v327_v22  ;;  %v202_v29 = vld [vmem:[%s1074_s15 + $0x40] sm:$0xff]  ;;  %v674_v34 = vld [vmem:[%s1074_s15 + $0xd8] sm:$0xff]  ;;  %s858_s8 = scalar_lea.vmem %s857_s7, 4096  ;;  %p859_p6 = scmp.lt.s32.totalorder %s1212_s20, %s857_s7 }
  0x42   : > { %279 = vrot.lane.b32.xlu0 %v1098_v11, %s939_s21  ;;  %v665_v30 = vld [vmem:[%s1074_s15 + $0x48] sm:$0xff]  ;;  %v243_v31 = vadd.f32 %v673_v27, %v210_v26  ;;  %v203_v35 = vld [vmem:[%s1074_s15 + $0x50] sm:$0xff]  ;;  %v666_v36 = vld [vmem:[%s1074_s15 + $0x58] sm:$0xff]  ;;  %v244_v37 = vadd.f32 %v674_v34, %v211_v33  ;;  %p855_p0 = pneg %p854_p11  ;;  %p860_p13 = scmp.lt.s32.totalorder %s858_s8, %s852_s28 }
  0x43   : > { %750 = vmatprep.subr.bf16.mxu0 %v749_v28  ;;  %753 = vmatprep.subr.bf16.mxu1 %v749_v28  ;;  %v235_v32 = vadd.f32 %v665_v30, %v202_v29  ;;  %v236_v38 = vadd.f32 %v666_v36, %v203_v35  ;;  %v212_v39 = vld [vmem:[%s1074_s15 + $0xe0] sm:$0xff]  ;;  %v675_v40 = vld [vmem:[%s1074_s15 + $0xe8] sm:$0xff]  ;;  %v213_v45 = vld [vmem:[%s1074_s15 + $0xf0] sm:$0xff] }
  0x44   : > { %752 = vmatpush3.bf16.msra.mxu0 %v749_v28  ;;  %754 = vmatpush3.bf16.msra.mxu1 %v749_v28  ;;  %v204_v41 = vld [vmem:[%s1074_s15 + $0x60] sm:$0xff]  ;;  %v667_v42 = vld [vmem:[%s1074_s15 + $0x68] sm:$0xff]  ;;  %v245_v43 = vadd.f32 %v675_v40, %v212_v39  ;;  %v676_v46 = vld [vmem:[%s1074_s15 + $0xf8] sm:$0xff]  ;;  %p861_p2 = por %p860_p13, %p859_p6 }
  0x45   : > { %283 = vrot.lane.b32.xlu1 %v1106_v16, %s939_s21  ;;  %v237_v44 = vadd.f32 %v667_v42, %v204_v41  ;;  %v205_v47 = vld [vmem:[%s1074_s15 + $0x70] sm:$0xff]  ;;  %v668_v48 = vld [vmem:[%s1074_s15 + $0x78] sm:$0xff]  ;;  %v246_v49 = vadd.f32 %v676_v46, %v213_v45 }
  0x46   : > { %267 = vrot.lane.b32.xlu0 %v1110_v17, %s939_s21  ;;  %v238_v50 = vadd.f32 %v668_v48, %v205_v47  ;;  %p862_p5 = pnand %p861_p2, %p855_p0 }
  0x49   : > { %285 = vrot.lane.b32.xlu1 %v1121_v23, %s939_s21 }
  0x4a   : > { %269 = vrot.lane.b32.xlu0 %v234_v25, %s939_s21 }
  0x4d   : > { %287 = vrot.lane.b32.xlu1 %v243_v31, %s939_s21 }
  0x4e   : > { %271 = vrot.lane.b32.xlu0 %v235_v32, %s939_s21 }
  0x51   : > { %289 = vrot.lane.b32.xlu1 %v244_v37, %s939_s21 }
  0x52   : > { %273 = vrot.lane.b32.xlu0 %v236_v38, %s939_s21 }
  0x55   : > { %291 = vrot.lane.b32.xlu1 %v245_v43, %s939_s21 }
  0x56   : > { %275 = vrot.lane.b32.xlu0 %v237_v44, %s939_s21 }
  0x59   : > { %293 = vrot.lane.b32.xlu1 %v246_v49, %s939_s21 }
  0x5a   : > { %277 = vrot.lane.b32.xlu0 %v238_v50, %s939_s21 }
  0xaf   : > { %v266_v51 = vpop.permute.xlu1 %265 }
  0xb0   : > { %v312_v52 = vadd.f32 %v266_v51, %v1083_v3  ;;  %v264_v53 = vpop.permute.xlu0 %263 }
  0xb1   : > { %v311_v54 = vadd.f32 %v264_v53, %v1088_v7 }
  0xb3   : > { %725 = vmatprep.mubr.msk.f32.mxu0 %vm329_vm0, %v311_v54  ;;  %v282_v55 = vpop.permute.xlu1 %281 }
  0xb4   : > { %v320_v56 = vadd.f32 %v282_v55, %v1094_v10  ;;  %726 = vmatmul.mubr.msk.f32.vlgmr.msra.gmra.mrb[0].mxu0 %vm329_vm0, %v312_v52  ;;  %v280_v57 = vpop.permute.xlu0 %279 }
  0xb5   : > { %v319_v58 = vadd.f32 %v280_v57, %v1098_v11 }
  0xb7   : > { %737 = vmatprep.mubr.msk.f32.mxu1 %vm329_vm0, %v319_v58  ;;  %v284_v59 = vpop.permute.xlu1 %283 }
  0xb8   : > { %v321_v60 = vadd.f32 %v284_v59, %v1106_v16  ;;  %738 = vmatmul.mubr.msk.f32.vlgmr.msra.gmra.mrb[0].mxu1 %vm329_vm0, %v320_v56  ;;  %v268_v61 = vpop.permute.xlu0 %267 }
  0xb9   : > { %v313_v62 = vadd.f32 %v268_v61, %v1110_v17 }
  0xba   : > { %740 = vmatprep.mubr.msk.f32.mxu1 %vm329_vm0, %v321_v60 }
  0xbb   : > { %728 = vmatprep.mubr.msk.f32.mxu0 %vm329_vm0, %v313_v62  ;;  %v286_v63 = vpop.permute.xlu1 %285 }
  0xbc   : > { %v322_v0 = vadd.f32 %v286_v63, %v1121_v23  ;;  %v270_v1 = vpop.permute.xlu0 %269 }
  0xbd   : > { %v314_v2 = vadd.f32 %v270_v1, %v234_v25 }
  0xbe   : > { %741 = vmatmul.mubr.msk.f32.gmra.mrb[2].mxu1 %vm329_vm0, %v322_v0 }
  0xbf   : > { %729 = vmatmul.mubr.msk.f32.gmra.mrb[2].mxu0 %vm329_vm0, %v314_v2  ;;  %v288_v3 = vpop.permute.xlu1 %287 }
  0xc0   : > { %v323_v4 = vadd.f32 %v288_v3, %v243_v31  ;;  %v272_v5 = vpop.permute.xlu0 %271 }
  0xc1   : > { %v315_v6 = vadd.f32 %v272_v5, %v235_v32 }
  0xc2   : > { %743 = vmatprep.mubr.msk.f32.mxu1 %vm329_vm0, %v323_v4 }
  0xc3   : > { %731 = vmatprep.mubr.msk.f32.mxu0 %vm329_vm0, %v315_v6  ;;  %v290_v7 = vpop.permute.xlu1 %289 }
  0xc4   : > { %v324_v8 = vadd.f32 %v290_v7, %v244_v37  ;;  %v274_v9 = vpop.permute.xlu0 %273 }
  0xc5   : > { %v316_v10 = vadd.f32 %v274_v9, %v236_v38 }
  0xc6   : > { %744 = vmatmul.mubr.msk.f32.gmra.mrb[4].mxu1 %vm329_vm0, %v324_v8 }
  0xc7   : > { %732 = vmatmul.mubr.msk.f32.gmra.mrb[4].mxu0 %vm329_vm0, %v316_v10  ;;  %v292_v11 = vpop.permute.xlu1 %291 }
  0xc8   : > { %v325_v12 = vadd.f32 %v292_v11, %v245_v43  ;;  %v276_v13 = vpop.permute.xlu0 %275 }
  0xc9   : > { %v317_v14 = vadd.f32 %v276_v13, %v237_v44 }
  0xca   : > { %746 = vmatprep.mubr.msk.f32.mxu1 %vm329_vm0, %v325_v12 }
  0xcb   : > { %734 = vmatprep.mubr.msk.f32.mxu0 %vm329_vm0, %v317_v14  ;;  %v294_v15 = vpop.permute.xlu1 %293 }
  0xcc   : > { %v326_v16 = vadd.f32 %v294_v15, %v246_v49  ;;  %v278_v17 = vpop.permute.xlu0 %277 }
  0xcd   : > { %v318_v18 = vadd.f32 %v278_v17, %v238_v50 }
  0xce   : > { %747 = vmatmul.mubr.msk.f32.gmra.mrb[6].mxu1 %vm329_vm0, %v326_v16 }
  0xcf   : > { %735 = vmatmul.mubr.msk.f32.gmra.mrb[6].mxu0 %vm329_vm0, %v318_v18 }
 0x187   : > { %v727_v19 = vpop.f32.mrb[0].mxu0 }
 0x188   : > { %525 = vst.msk [vmem:[%s1179_s18 + $0x8] sm:$0xff] %vm523_vm1, %v727_v19  ;;  %v444_v20 = vpop.f32.mrb[1].mxu0 }
 0x189   : > { %524 = vst.msk [vmem:[%s1179_s18] sm:$0xff] %vm523_vm1, %v444_v20 }
 0x18b   : > { %v739_v21 = vpop.f32.mrb[0].mxu1 }
 0x18c   : > { %533 = vst.msk [vmem:[%s1179_s18 + $0x48] sm:$0xff] %vm523_vm1, %v739_v21  ;;  %v484_v22 = vpop.f32.mrb[1].mxu1 }
 0x18d   : > { %532 = vst.msk [vmem:[%s1179_s18 + $0x40] sm:$0xff] %vm523_vm1, %v484_v22 }
 0x191   : > { %v742_v23 = vpop.f32.mrb[2].mxu1 }
 0x192   : > { %v730_v24 = vpop.f32.mrb[2].mxu0  ;;  %535 = vst.msk [vmem:[%s1179_s18 + $0x58] sm:$0xff] %vm523_vm1, %v742_v23  ;;  %v494_v25 = vpop.f32.mrb[3].mxu1 }
 0x193   : > { %527 = vst.msk [vmem:[%s1179_s18 + $0x18] sm:$0xff] %vm523_vm1, %v730_v24  ;;  %v454_v26 = vpop.f32.mrb[3].mxu0  ;;  %534 = vst.msk [vmem:[%s1179_s18 + $0x50] sm:$0xff] %vm523_vm1, %v494_v25 }
 0x194   : > { %526 = vst.msk [vmem:[%s1179_s18 + $0x10] sm:$0xff] %vm523_vm1, %v454_v26 }
 0x199   : > { %v745_v27 = vpop.f32.mrb[4].mxu1 }
 0x19a   : > { %v733_v28 = vpop.f32.mrb[4].mxu0  ;;  %537 = vst.msk [vmem:[%s1179_s18 + $0x68] sm:$0xff] %vm523_vm1, %v745_v27  ;;  %v504_v29 = vpop.f32.mrb[5].mxu1 }
 0x19b   : > { %529 = vst.msk [vmem:[%s1179_s18 + $0x28] sm:$0xff] %vm523_vm1, %v733_v28  ;;  %v464_v30 = vpop.f32.mrb[5].mxu0  ;;  %536 = vst.msk [vmem:[%s1179_s18 + $0x60] sm:$0xff] %vm523_vm1, %v504_v29 }
 0x19c   : > { %528 = vst.msk [vmem:[%s1179_s18 + $0x20] sm:$0xff] %vm523_vm1, %v464_v30 }
 0x1a1   : > { %v748_v31 = vpop.f32.mrb[6].mxu1 }
 0x1a2   : > { %v736_v32 = vpop.f32.mrb[6].mxu0  ;;  %539 = vst.msk [vmem:[%s1179_s18 + $0x78] sm:$0xff] %vm523_vm1, %v748_v31  ;;  %v514_v33 = vpop.f32.mrb[7].mxu1 }
 0x1a3   : > { %531 = vst.msk [vmem:[%s1179_s18 + $0x38] sm:$0xff] %vm523_vm1, %v736_v32  ;;  %v474_v34 = vpop.f32.mrb[7].mxu0  ;;  %538 = vst.msk [vmem:[%s1179_s18 + $0x70] sm:$0xff] %vm523_vm1, %v514_v33 }
 0x1a4   : > { %530 = vst.msk [vmem:[%s1179_s18 + $0x30] sm:$0xff] %vm523_vm1, %v474_v34 }
 0x1a5   : > { %865 = shalt.err (!%p862_p5)
}
 0x1a6   : > { %s866_s15 = scalar_lea.hbm %s1210_s27, 2048  ;;  %s870_s4 = scalar_lea.hbm %s1271_s2, 4096 }
 0x1a7   : > { %p867_p4 = scmp.ne.s32.totalorder %s1210_s27, %s866_s15  ;;  %p871_p12 = scmp.lt.u32.totalorder %s1210_s27, %s1271_s2 }
 0x1a8   : > { %p872_p1 = scmp.lt.u32.totalorder %s870_s4, %s866_s15  ;;  %p874_p8 = scmp.lt.u32.totalorder %s866_s15, %s1210_s27 }
 0x1a9   : > { %p868_p7 = pnand %p867_p4, %p1279_p9 }
 0x1aa   : > { %p873_p3 = por %p872_p1, %p871_p12 }
 0x1ab   : > { %p869_p10 = pneg %p868_p7 }
 0x1ac   : > { %p875_p11 = por %p874_p8, %p873_p3 }
 0x1ae   : > { %p876_p0 = pnand %p875_p11, %p869_p10 }
 0x1b0   : > { %879 = shalt.err (!%p876_p0)
}
 0x1b1   : > { %s941_s16 = smov 128   ;;  %s942_s18 = smov 8  }
 0x1b2   : > { %757 = dma.vmem_to_hbm [thread:$0]  (%p1279_p9), %s1212_s20, 2048, %s1210_s27, %s541_s12, %s941_s16, %s941_s16, %s942_s18  }
 0x1b3 PF: > { %s573_s19 = sand.u32 1, %s914_s9   ;;  %p1280_p6 = scmp.ne.s32.totalorder %s1276_s24, 0 }
 0x1b4   : > { %p1281_p13 = scmp.ge.s32.totalorder %s934_s14, 2  ;;  %s574_s25 = scalar_lea.sflag [#allocation4], %s573_s19 }
 0x1b6   : > { %p764_p2 = pnand %p1281_p13, %p1280_p6 }
 0x1b8   : > { %909 = dma.done.wait (!%p764_p2), %s574_s25, 2048  }
 0x1b9   : > { %911 = vsyncadd (!%p764_p2), %s574_s25, 4294965248  ;;  %s18_s14 = sadd.s32 1, %s934_s14   ;;  %s1282_s9 = smov %s918_s10 }
 0x1ba   : > { %p15_p5 = scmp.ge.s32.totalorder %s18_s14, 4   ;;  %s1283_s10 = smov %s922_s11 }
 0x1bb   : > { %s1284_s11 = smov %s1014_s23  ;;  %s1285_s12 = smov %s930_s13 }
 0x1bc   : > { %s1286_s13 = smov %s1288_s17  ;;  %17 = sbr.rel (!%p15_p5) target bundleno = 6 (0x6), region = 74 }
 0x1c3   :  { %579 = vsyncpa [#allocation3], 1 }
 0x1c4   :  { %581 = vsyncpa [#allocation3 + $0x1], 1 }
 0x1c5   :  { %582 = vsyncpa [#allocation4], 1 }
 0x1c6   :  { %584 = vsyncpa [#allocation4 + $0x1], 1 }

</bundles_post_ra>
